<compile_context>
chip_gen: v7x
topology: tpu7x:2x2x1
jax: 0.10.0
libtpu: 0.0.40
codegen_flags: <defaults>
</compile_context>

<pallas_src>
import functools
import math

import jax
import jax.numpy as jnp
from jax.experimental import pallas as pl
from jax.experimental.pallas import tpu as pltpu


def _cdiv(a, b):
    return -(-a // b)


def _round_up(a, b):
    return _cdiv(a, b) * b


def _kl_regression_kernel(scores_ref, sd_ref, gt_ref, out_ref, *, eps, n_mc, batch, block_b):
    """Per-block partial KL-regression loss for one (block_b, N) tile.

    out_ref: (1, 1) partial sum over the rows of this block that are inside the true
             batch:  sum_i [ logsumexp_j(s_ij - log(q_ij+eps)) - log(N)
                             - mean_j(s_ij * p_ij / (q_ij+eps)) ]
    """
    scores = scores_ref[...].astype(jnp.float32)              # (TB, N)
    sd_eps = sd_ref[...].astype(jnp.float32) + eps             # (TB, N)
    gt = gt_ref[...].astype(jnp.float32)                       # (TB, N)

    # Numerically-stable logsumexp over the MC (lane) dimension.
    exp_val = scores - jnp.log(sd_eps)                                           # (TB, N)
    m = jnp.max(exp_val, axis=-1, keepdims=True)                                 # (TB, 1)
    lse = m + jnp.log(jnp.sum(jnp.exp(exp_val - m), axis=-1, keepdims=True))     # (TB, 1)

    # mean(scores * gt / (sd + eps)) over the MC dim.  Exact reciprocal (EUP path)
    # instead of a VALU divide; keeps the 1e-4 tolerance vs. the reference.
    inv_sd = pl.reciprocal(sd_eps)
    mean_term = jnp.mean(scores * gt * inv_sd, axis=-1, keepdims=True)           # (TB, 1)

    per_row = lse - math.log(n_mc) - mean_term                                   # (TB, 1)

    # Mask rows past the true batch (ragged last block; out-of-bounds rows contain
    # undefined data that may even produce NaN/Inf -- jnp.where selects 0 regardless).
    row = jax.lax.broadcasted_iota(jnp.int32, per_row.shape, 0)                  # (TB, 1)
    valid = (row + pl.program_id(0) * block_b) < batch
    masked = jnp.where(valid, per_row, 0.0)

    out_ref[...] = jnp.sum(masked, axis=0, keepdims=True)                        # (1, 1)


def _choose_tiling(batch, n_mc, itemsize):
    """Largest batch tile that fits a conservative VMEM budget on any TPU generation."""
    f32 = 4
    # Packed dtypes tile 16 (bf16) / 32 (fp8, int8) rows per sublane group.
    sub = 8 if itemsize >= 4 else (16 if itemsize == 2 else 32)

    # Per batch-row VMEM footprint of one grid step:
    #   3 inputs x 2 pipeline buffers (itemsize each)
    # + f32 elementwise temporaries Mosaic materializes
    #   (exp_val, exp(exp_val - m), inv_sd, products ~ 5, plus 3 upcast copies for bf16).
    n_temps = 5 + (3 if itemsize < 4 else 0)
    per_row = 3 * 2 * n_mc * itemsize + n_temps * n_mc * f32

    # ~10 MiB block-resident budget: comfortably under every generation's scoped VMEM.
    budget = 10 << 20
    max_blk = max(sub, (budget // per_row) // sub * sub)

    if batch <= sub:
        block_b = batch                     # full-dim block: exempt from divisibility rule
        num_blocks = 1
    else:
        block_b = min(max_blk, _round_up(batch, sub))
        num_blocks = _cdiv(batch, block_b)
        # Keep >= 4 grid steps when the batch allows it: lets v7x's two TensorCores
        # split the "parallel" axis and restores DMA/compute overlap on all gens.
        min_blocks = 4
        if num_blocks < min_blocks and batch > min_blocks * sub:
            block_b = _round_up(_cdiv(batch, min_blocks), sub)
            num_blocks = _cdiv(batch, block_b)

    # Explicit scoped-VMEM limit: actual footprint + headroom, clamped to a range that
    # is valid on every generation (v7x has only 64 MiB physical VMEM per TensorCore).
    out_tile = 2 * 8 * 128 * f32            # double-buffered (1,1) output, (8,128)-padded
    footprint = block_b * per_row + out_tile
    vmem_limit = int(min(max(footprint * 1.3, 16 << 20), 48 << 20))
    return block_b, num_blocks, vmem_limit


def kl_regression(scores, sample_density, gt_density, eps=0.0):
    """Pallas implementation of KLRegression.forward with mc_dim = -1."""
    assert scores.shape == sample_density.shape == gt_density.shape
    assert scores.ndim == 2, "expected (batch, mc_samples)"
    B, N = scores.shape

    itemsize = jnp.dtype(scores.dtype).itemsize
    block_b, num_blocks, vmem_limit = _choose_tiling(B, N, itemsize)

    kernel = functools.partial(
        _kl_regression_kernel, eps=eps, n_mc=N, batch=B, block_b=block_b
    )

    cost = pl.CostEstimate(
        flops=8 * B * N,
        transcendentals=3 * B * N,                      # log, exp, reciprocal
        bytes_accessed=3 * B * N * itemsize + num_blocks * 4,
    )

    partial_sums = pl.pallas_call(
        kernel,
        out_shape=jax.ShapeDtypeStruct((num_blocks, 1), jnp.float32),
        grid=(num_blocks,),
        in_specs=[
            pl.BlockSpec((block_b, N), lambda i: (i, 0)),
            pl.BlockSpec((block_b, N), lambda i: (i, 0)),
            pl.BlockSpec((block_b, N), lambda i: (i, 0)),
        ],
        out_specs=pl.BlockSpec((1, 1), lambda i: (i, 0)),
        compiler_params=pltpu.CompilerParams(
            dimension_semantics=("parallel",),          # independent per-block partials
            vmem_limit_bytes=vmem_limit,
        ),
        cost_estimate=cost,
    )(scores, sample_density, gt_density)

    # Tiny final reduction in the wrapper (f32, single pass).
    return jnp.sum(partial_sums) / B


def kl_regression_ref(scores, sample_density, gt_density, eps=0.0):
    """Pure-JAX reference (mirrors the PyTorch forward)."""
    scores = scores.astype(jnp.float32)
    sample_density = sample_density.astype(jnp.float32)
    gt_density = gt_density.astype(jnp.float32)
    exp_val = scores - jnp.log(sample_density + eps)
    L = (
        jax.nn.logsumexp(exp_val, axis=-1)
        - math.log(scores.shape[-1])
        - jnp.mean(scores * (gt_density / (sample_density + eps)), axis=-1)
    )
    return jnp.mean(L)


if __name__ == "__main__":
    key = jax.random.PRNGKey(0)
    k1, k2, k3 = jax.random.split(key, 3)

    # Small shapes: batch of 13 distributions (non-multiple of 8 exercises the in-kernel
    # ragged-row masking), 128 MC samples on the lane axis.
    B, N = 13, 128
    scores = jax.random.normal(k1, (B, N), dtype=jnp.float32)
    # densities are strictly positive
    sample_density = jax.random.uniform(k2, (B, N), dtype=jnp.float32, minval=0.1, maxval=1.0)
    gt_density = jax.random.uniform(k3, (B, N), dtype=jnp.float32, minval=0.1, maxval=1.0)

    for test_eps in (0.0, 1e-7):
        loss = jax.block_until_ready(kl_regression(scores, sample_density, gt_density, eps=test_eps))
        ref = kl_regression_ref(scores, sample_density, gt_density, eps=test_eps)
        assert jnp.allclose(loss, ref, atol=1e-4, rtol=1e-4), (test_eps, loss, ref)

    # Multi-block + ragged last block path (still small).
    B2, N2 = 137, 256
    s2 = jax.random.normal(k1, (B2, N2), dtype=jnp.float32)
    q2 = jax.random.uniform(k2, (B2, N2), dtype=jnp.float32, minval=0.1, maxval=1.0)
    p2 = jax.random.uniform(k3, (B2, N2), dtype=jnp.float32, minval=0.1, maxval=1.0)
    loss2 = jax.block_until_ready(kl_regression(s2, q2, p2, eps=1e-7))
    ref2 = kl_regression_ref(s2, q2, p2, eps=1e-7)
    assert jnp.allclose(loss2, ref2, atol=1e-4, rtol=1e-4), (loss2, ref2)

    # bf16 input path (halves HBM traffic; kernel upcasts in-register, reduces in f32).
    s3 = scores.astype(jnp.bfloat16)
    q3 = sample_density.astype(jnp.bfloat16)
    p3 = gt_density.astype(jnp.bfloat16)
    loss3 = jax.block_until_ready(kl_regression(s3, q3, p3, eps=1e-7))
    ref3 = kl_regression_ref(s3, q3, p3, eps=1e-7)
    assert jnp.allclose(loss3, ref3, atol=5e-2, rtol=5e-2), (loss3, ref3)

    print("KERNEL_OK")
</pallas_src>

<mosaic_0001>
module attributes {stable_mosaic.version = 11 : i64} {
  func.func @_kl_regression_kernel(%arg0: i32, %arg1: memref<16x128xf32, #tpu.memory_space<vmem>>, %arg2: memref<16x128xf32, #tpu.memory_space<vmem>>, %arg3: memref<16x128xf32, #tpu.memory_space<vmem>>, %arg4: memref<1x1xf32, #tpu.memory_space<vmem>>) attributes {dimension_semantics = [#tpu.dimension_semantics<parallel>], iteration_bounds = array<i64: 1>, scalar_prefetch = 0 : i64, scratch_operands = 0 : i64, tpu.core_type = #tpu.core_type<tc>, window_params = [{transform_indices = @transform_0, window_bounds = array<i64: 16, 128>}, {transform_indices = @transform_1, window_bounds = array<i64: 16, 128>}, {transform_indices = @transform_2, window_bounds = array<i64: 16, 128>}, {transform_indices = @transform_3, window_bounds = array<i64: 1, 1>}]} {
    %c0 = arith.constant 0 : index
    %c0_0 = arith.constant 0 : index
    %0 = vector.load %arg1[%c0, %c0_0] : memref<16x128xf32, #tpu.memory_space<vmem>>, vector<16x128xf32>
    %c0_1 = arith.constant 0 : index
    %c0_2 = arith.constant 0 : index
    %1 = vector.load %arg2[%c0_1, %c0_2] : memref<16x128xf32, #tpu.memory_space<vmem>>, vector<16x128xf32>
    %cst = arith.constant 0.000000e+00 : f32
    %2 = vector.broadcast %cst : f32 to vector<16x128xf32>
    %3 = arith.addf %1, %2 : vector<16x128xf32>
    %c0_3 = arith.constant 0 : index
    %c0_4 = arith.constant 0 : index
    %4 = vector.load %arg3[%c0_3, %c0_4] : memref<16x128xf32, #tpu.memory_space<vmem>>, vector<16x128xf32>
    %5 = math.log %3 : vector<16x128xf32>
    %6 = arith.subf %0, %5 : vector<16x128xf32>
    %cst_5 = arith.constant dense<0xFF800000> : vector<16xf32>
    %7 = vector.multi_reduction <maximumf>, %6, %cst_5 [1] : vector<16x128xf32> to vector<16xf32>
    %8 = vector.shape_cast %7 : vector<16xf32> to vector<16x1xf32>
    %9 = vector.broadcast %8 : vector<16x1xf32> to vector<16x128xf32>
    %10 = arith.subf %6, %9 : vector<16x128xf32>
    %11 = math.exp %10 : vector<16x128xf32>
    %cst_6 = arith.constant dense<0.000000e+00> : vector<16xf32>
    %12 = vector.multi_reduction <add>, %11, %cst_6 [1] : vector<16x128xf32> to vector<16xf32>
    %13 = vector.shape_cast %12 : vector<16xf32> to vector<16x1xf32>
    %14 = math.log %13 : vector<16x1xf32>
    %15 = arith.addf %8, %14 : vector<16x1xf32>
    %16 = tpu.reciprocal %3 : vector<16x128xf32> -> vector<16x128xf32>
    %17 = arith.mulf %0, %4 : vector<16x128xf32>
    %18 = arith.mulf %17, %16 : vector<16x128xf32>
    %cst_7 = arith.constant dense<0.000000e+00> : vector<16xf32>
    %19 = vector.multi_reduction <add>, %18, %cst_7 [1] : vector<16x128xf32> to vector<16xf32>
    %20 = vector.shape_cast %19 : vector<16xf32> to vector<16x1xf32>
    %cst_8 = arith.constant 1.280000e+02 : f32
    %21 = vector.broadcast %cst_8 : f32 to vector<16x1xf32>
    %22 = arith.divf %20, %21 : vector<16x1xf32>
    %cst_9 = arith.constant 4.85203028 : f32
    %23 = vector.broadcast %cst_9 : f32 to vector<16x1xf32>
    %24 = arith.subf %15, %23 : vector<16x1xf32>
    %25 = arith.subf %24, %22 : vector<16x1xf32>
    %26 = tpu.iota {dimensions = array<i32: 0>} : vector<16x1xi32>
    %c16_i32 = arith.constant 16 : i32
    %27 = arith.muli %arg0, %c16_i32 : i32
    %28 = vector.broadcast %27 : i32 to vector<16x1xi32>
    %29 = arith.addi %26, %28 : vector<16x1xi32>
    %c13_i32 = arith.constant 13 : i32
    %30 = vector.broadcast %c13_i32 : i32 to vector<16x1xi32>
    %31 = arith.cmpi slt, %29, %30 : vector<16x1xi32>
    %cst_10 = arith.constant 0.000000e+00 : f32
    %32 = vector.broadcast %cst_10 : f32 to vector<16x1xf32>
    %33 = arith.select %31, %25, %32 : vector<16x1xi1>, vector<16x1xf32>
    %cst_11 = arith.constant dense<0.000000e+00> : vector<1xf32>
    %34 = vector.multi_reduction <add>, %33, %cst_11 [0] : vector<16x1xf32> to vector<1xf32>
    %35 = vector.shape_cast %34 : vector<1xf32> to vector<1x1xf32>
    %c0_12 = arith.constant 0 : index
    %c0_13 = arith.constant 0 : index
    %36 = vector.load %arg4[%c0_12, %c0_13] : memref<1x1xf32, #tpu.memory_space<vmem>>, vector<1x1xf32>
    tpu.vector_store %arg4[%c0_12, %c0_13], %35 {strides = array<i32>} : memref<1x1xf32, #tpu.memory_space<vmem>>, vector<1x1xf32>,
    return
  }
  func.func @transform_0(%arg0: i32) -> (i32, i32) {
    %c0_i32 = arith.constant 0 : i32
    %c0_i32_0 = arith.constant 0 : i32
    return %arg0, %c0_i32 : i32, i32
  }
  func.func @transform_1(%arg0: i32) -> (i32, i32) {
    %c0_i32 = arith.constant 0 : i32
    %c0_i32_0 = arith.constant 0 : i32
    return %arg0, %c0_i32 : i32, i32
  }
  func.func @transform_2(%arg0: i32) -> (i32, i32) {
    %c0_i32 = arith.constant 0 : i32
    %c0_i32_0 = arith.constant 0 : i32
    return %arg0, %c0_i32 : i32, i32
  }
  func.func @transform_3(%arg0: i32) -> (i32, i32) {
    %c0_i32 = arith.constant 0 : i32
    %c0_i32_0 = arith.constant 0 : i32
    return %arg0, %c0_i32 : i32, i32
  }
}

</mosaic_0001>

<bundles_post_ra>
// kernel: tpu_custom_call.1
= control target key start
LH: loop header
LB: loop body
LE: loop exit
PB: predicated region body
PF: predicated region fallthrough
CT: control target
= control target key end

     0   :  { %8 = vsyncpa [#allocation3], 0  ;;  %s351_s0 = inlined_call_operand.hbm [shape: f32[13,128], index: 0, kind: input, shape index: {}]   ;;  %s352_s1 = inlined_call_operand.hbm [shape: f32[13,128], index: 1, kind: input, shape index: {}]   ;;  %s353_s2 = inlined_call_operand.hbm [shape: f32[13,128], index: 2, kind: input, shape index: {}]   ;;  %s354_s3 = inlined_call_operand.hbm [shape: f32[1,1], index: 3, kind: output, shape index: {}]  }
   0x1   :  { %9 = vsyncpa [#allocation6], 0 }
   0x2   :  { %10 = vsyncpa [#allocation4], 0  ;;  %s261_s12 = smov [#allocation5]   ;;  %s262_s14 = smov [#allocation2]  }
   0x3   :  { %s28_s13 = sshll.u32 %s261_s12, 4  ;;  %s16_s15 = sshll.u32 %s262_s14, 4  ;;  %s29_s13 = int_to_ptr.vmem [resolvable:$true] %s28_s13  ;;  %s287_s15 = int_to_ptr.vmem [resolvable:$true] %s16_s15 }
   0x4   :  { %s167_s18 = scalar_lea.hbm %s352_s1, 256 }
   0x5   :  { %p168_p0 = scmp.ne.s32.totalorder %s352_s1, %s167_s18  ;;  %p171_p1 = scmp.lt.u32.totalorder %s167_s18, %s352_s1 }
   0x7   :  { %p173_p2 = pnand %p171_p1, %p168_p0 }
   0x9   :  { %176 = shalt.err (!%p173_p2)
}
   0xa   :  { %s177_s23 = scalar_lea.vmem %s29_s13, 256  ;;  %p182_p4 = scmp.lt.s32.totalorder %s29_s13, %s29_s13 }
   0xb   :  { %p178_p3 = scmp.ne.s32.totalorder %s29_s13, %s177_s23  ;;  %p183_p5 = scmp.lt.s32.totalorder %s177_s23, %s177_s23 }
   0xd   :  { %p184_p6 = por %p183_p5, %p182_p4 }
   0xf   :  { %p185_p7 = pnand %p184_p6, %p178_p3 }
  0x11   :  { %188 = shalt.err (!%p185_p7)
}
  0x12   :  { %s263_s24 = smov 128   ;;  %s264_s25 = smov 8  }
  0x13   :  { %34 = dma.hbm_to_vmem [thread:$0]  %s352_s1, 256, %s29_s13, [#allocation6], %s263_s24, %s263_s24, %s264_s25  }
  0x14   :  { %s189_s30 = scalar_lea.hbm %s351_s0, 256 }
  0x15   :  { %p190_p8 = scmp.ne.s32.totalorder %s351_s0, %s189_s30  ;;  %p193_p9 = scmp.lt.u32.totalorder %s189_s30, %s351_s0 }
  0x17   :  { %p195_p10 = pnand %p193_p9, %p190_p8 }
  0x19   :  { %198 = shalt.err (!%p195_p10)
}
  0x1a   :  { %s199_s8 = scalar_lea.vmem %s287_s15, 256  ;;  %p204_p12 = scmp.lt.s32.totalorder %s287_s15, %s287_s15 }
  0x1b   :  { %p200_p11 = scmp.ne.s32.totalorder %s287_s15, %s199_s8  ;;  %p205_p13 = scmp.lt.s32.totalorder %s199_s8, %s199_s8 }
  0x1d   :  { %p206_p0 = por %p205_p13, %p204_p12 }
  0x1f   :  { %p207_p1 = pnand %p206_p0, %p200_p11 }
  0x21   :  { %210 = shalt.err (!%p207_p1)
}
  0x22   :  { %22 = dma.hbm_to_vmem [thread:$0]  %s351_s0, 256, %s287_s15, [#allocation3], %s263_s24, %s263_s24, %s264_s25  }
  0x23   :  { %s265_s10 = smov [#allocation7]   ;;  %s211_s14 = scalar_lea.hbm %s353_s2, 256 }
  0x24   :  { %s40_s11 = sshll.u32 %s265_s10, 4  ;;  %p212_p2 = scmp.ne.s32.totalorder %s353_s2, %s211_s14  ;;  %s41_s11 = int_to_ptr.vmem [resolvable:$true] %s40_s11 }
  0x25   :  { %p215_p3 = scmp.lt.u32.totalorder %s211_s14, %s353_s2 }
  0x27   :  { %p217_p4 = pnand %p215_p3, %p212_p2 }
  0x29   :  { %220 = shalt.err (!%p217_p4)
}
  0x2a   :  { %s221_s20 = scalar_lea.vmem %s41_s11, 256  ;;  %p226_p6 = scmp.lt.s32.totalorder %s41_s11, %s41_s11 }
  0x2b   :  { %p222_p5 = scmp.ne.s32.totalorder %s41_s11, %s221_s20  ;;  %p227_p7 = scmp.lt.s32.totalorder %s221_s20, %s221_s20 }
  0x2d   :  { %p228_p8 = por %p227_p7, %p226_p6 }
  0x2f   :  { %p229_p9 = pnand %p228_p8, %p222_p5 }
  0x31   :  { %232 = shalt.err (!%p229_p9)
}
  0x32   :  { %46 = dma.hbm_to_vmem [thread:$0]  %s353_s2, 256, %s41_s11, [#allocation6], %s263_s24, %s263_s24, %s264_s25  }
  0x33   :  { %255 = dma.done.wait [#allocation3], 256  }
  0x34   :  { %256 = vsyncadd [#allocation3], 4294967040 }
  0x35   :  { %257 = dma.done.wait [#allocation6], 512  }
  0x36   :  { %258 = vsyncadd [#allocation6], 4294966784  ;;  %v59_v0 = vld [vmem:[#allocation5 + $0x8] sm:$0xff]  ;;  %v58_v1 = vld [vmem:[#allocation5] sm:$0xff]  ;;  %v107_v28 = vlaneseq  ;;  %s266_s2 = smov [#allocation8]   ;;  %vm125_vm1 = vcmask 0  }
  0x37   :  { %151 = vlog2.f32 %v59_v0  ;;  %v57_v3 = vld [vmem:[#allocation2 + $0x8] sm:$0xff]  ;;  %v56_v6 = vld [vmem:[#allocation2] sm:$0xff]  ;;  %s133_s21 = sshll.u32 %s266_s2, 4  ;;  %s134_s21 = int_to_ptr.vmem [resolvable:$true] %s133_s21 }
  0x38   :  { %153 = vlog2.f32 %v58_v1  ;;  %v63_v12 = vld [vmem:[#allocation7 + $0x8] sm:$0xff]  ;;  %v62_v13 = vld [vmem:[#allocation7] sm:$0xff]  ;;  %v108_v31 = vshrl.u32 %v107_v28, 7  ;;  %s233_s22 = scalar_lea.vmem %s134_s21, 16  ;;  %s237_s23 = scalar_lea.vmem %s134_s21, 32 }
  0x39   :  { %155 = vrcp.f32 %v59_v0  ;;  %v93_v14 = vmul.f32 %v63_v12, %v57_v3  ;;  %v92_v15 = vmul.f32 %v62_v13, %v56_v6  ;;  %p234_p10 = scmp.ne.s32.totalorder %s134_s21, %s233_s22  ;;  %p238_p11 = scmp.lt.s32.totalorder %s134_s21, %s134_s21 }
  0x3a   :  { %157 = vrcp.f32 %v58_v1  ;;  %v109_v39 = vadd.s32 8, %v108_v31  ;;  %p239_p12 = scmp.lt.s32.totalorder %s237_s23, %s233_s22 }
  0x3c   :  { %vm115_vm0 = vcmp.lt.s32.totalorder %v109_v39, 13  ;;  %p240_p13 = por %p239_p12, %p238_p11 }
  0x3e   :  { %p241_p0 = pnand %p240_p13, %p234_p10 }
  0x41   :  { %v152_v2 = vpop.eup %151 }
  0x42   :  { %v67_v4 = vmul.f32 0.6931472, %v152_v2  ;;  %v154_v5 = vpop.eup %153 }
  0x43   :  { %v65_v8 = vmul.f32 0.6931472, %v154_v5  ;;  %v156_v10 = vpop.eup %155 }
  0x44   :  { %v69_v7 = vsub.f32 %v57_v3, %v67_v4  ;;  %v158_v11 = vpop.eup %157  ;;  %v95_v16 = vmul.f32 %v156_v10, %v93_v14 }
  0x45   :  { %v68_v9 = vsub.f32 %v56_v6, %v65_v8  ;;  %v94_v17 = vmul.f32 %v158_v11, %v92_v15 }
  0x46   :  { %72 = vmax.xlane.f32.xlu0 %v69_v7 }
  0x4a   :  { %70 = vmax.xlane.f32.xlu0 %v68_v9 }
  0x4e   :  { %98 = vadd.xlane.f32.xlu0 %v95_v16 }
  0xd3   :  { %v73_v18 = vpop.xlane.xlu0 %72 }
  0xd4   :  { %v75_v19 = vsub.f32 %v69_v7, %v73_v18 }
  0xd6   :  { %v78_v20 = vmul.f32 1.442695, %v75_v19 }
  0xd7   :  { %v71_v21 = vpop.xlane.xlu0 %70 }
  0xd8   :  { %v74_v22 = vsub.f32 %v68_v9, %v71_v21  ;;  %159 = vpow2.f32 %v78_v20 }
  0xda   :  { %v76_v23 = vmul.f32 1.442695, %v74_v22 }
  0xdb   :  { %v99_v32 = vpop.xlane.xlu0 %98 }
  0xdc   :  { %161 = vpow2.f32 %v76_v23  ;;  %v102_v35 = vmul.f32 0.0078125, %v99_v32 }
  0xe2   :  { %v160_v24 = vpop.eup %159 }
  0xe3   :  { %82 = vadd.xlane.f32.xlu1 %v160_v24 }
  0xe6   :  { %v162_v25 = vpop.eup %161 }
  0xe7   :  { %80 = vadd.xlane.f32.xlu1 %v162_v25 }
  0xeb   :  { %96 = vadd.xlane.f32.xlu1 %v94_v17 }
 0x170   :  { %v83_v26 = vpop.xlane.xlu1 %82 }
 0x171   :  { %163 = vlog2.f32 %v83_v26 }
 0x174   :  { %v81_v27 = vpop.xlane.xlu1 %80 }
 0x175   :  { %165 = vlog2.f32 %v81_v27 }
 0x178   :  { %v97_v36 = vpop.xlane.xlu1 %96 }
 0x179   :  { %v101_v41 = vmul.f32 0.0078125, %v97_v36 }
 0x17b   :  { %v164_v29 = vpop.eup %163 }
 0x17c   :  { %v87_v30 = vmul.f32 0.6931472, %v164_v29 }
 0x17e   :  { %v89_v33 = vadd.f32 %v87_v30, %v73_v18 }
 0x17f   :  { %v166_v34 = vpop.eup %165 }
 0x180   :  { %v85_v37 = vmul.f32 0.6931472, %v166_v34  ;;  %v144_v38 = vadd.f32 -4.8520303, %v89_v33 }
 0x182   :  { %v88_v40 = vadd.f32 %v85_v37, %v71_v21  ;;  %v106_v42 = vsub.f32 %v144_v38, %v102_v35 }
 0x184   :  { %v143_v43 = vadd.f32 -4.8520303, %v88_v40  ;;  %v117_v45 = vsel %vm115_vm0, %v106_v42, 0.0 }
 0x186   :  { %v105_v44 = vsub.f32 %v143_v43, %v101_v41 }
 0x188   :  { %v118_v46 = vadd.f32 %v117_v45, %v105_v44 }
 0x18a   :  { %v119_v47 = vrot.slane %v118_v46, 4 }
 0x18c   :  { %v120_v48 = vadd.f32 %v119_v47, %v118_v46 }
 0x18e   :  { %v121_v49 = vrot.slane %v120_v48, 2 }
 0x190   :  { %v122_v50 = vadd.f32 %v121_v49, %v120_v48 }
 0x192   :  { %v123_v51 = vrot.slane %v122_v50, 1 }
 0x194   :  { %v124_v52 = vadd.f32 %v123_v51, %v122_v50 }
 0x196   :  { %126 = vst.msk [vmem:[#allocation8] sm:$0x1] %vm125_vm1, %v124_v52 }
 0x197   :  { %244 = shalt.err (!%p241_p0)
}
 0x198   :  { %s245_s26 = scalar_lea.hbm %s354_s3, 16 }
 0x199   :  { %p246_p1 = scmp.ne.s32.totalorder %s354_s3, %s245_s26  ;;  %p249_p2 = scmp.lt.u32.totalorder %s245_s26, %s354_s3 }
 0x19b   :  { %p251_p3 = pnand %p249_p2, %p246_p1 }
 0x19d   :  { %254 = shalt.err (!%p251_p3)
}
 0x19e   :  { %136 = dma.vmem_to_hbm [thread:$0]  %s134_s21, 16, %s354_s3, [#allocation4]  }
 0x19f   :  { %259 = dma.done.wait [#allocation4], 16  }
 0x1a0   :  { %260 = vsyncadd [#allocation4], 4294967280 }
 0x1a1   :  { %140 = vsyncpa [#allocation3], 1 }
 0x1a2   :  { %141 = vsyncpa [#allocation6], 1 }
 0x1a3   :  { %142 = vsyncpa [#allocation4], 1 }

</bundles_post_ra>
